<compile_context>
chip_gen: v7x
topology: tpu7x:2x2x1
jax: 0.10.0
libtpu: 0.0.40
codegen_flags: <defaults>
</compile_context>

<pallas_src>
import jax
import jax.numpy as jnp
from jax.experimental import pallas as pl
from jax.experimental.pallas import tpu as pltpu

K_IN = 85          # true input feature count (kept unpadded)
H1 = 128
H2 = 64
N_OUT = 2          # true logits width
N_PAD = 8          # padded logits width (sublane-clean store, tiny write traffic)


def _round_up(x, m):
    return (x + m - 1) // m * m


def _choose_tile(B, tb_max):
    """Balanced batch tile: multiple of 8, >=2 steps for v7x when batch is big."""
    B8 = _round_up(max(B, 1), 8)
    n_steps = pl.cdiv(B8, tb_max)
    # v7x has 2 TensorCores sharing the "parallel" grid axis: make sure a big
    # batch splits into >=2 grid steps (>=2048-row tiles). On 1-TC chips the
    # extra ~0.35 us step overhead is negligible at these tile sizes.
    if n_steps == 1 and B8 >= 2 * 2048:
        n_steps = 2
    return _round_up(pl.cdiv(B8, n_steps), 8)


def _mlp_kernel(x_ref, w1_ref, b1_ref, w2_ref, b2_ref, w3_ref, b3_ref, o_ref):
    # fc1 + ReLU: cast x f32 -> bf16 on the VPU, bf16 MXU matmul, f32 accumulate.
    x = x_ref[...].astype(jnp.bfloat16)
    h1 = jnp.dot(x, w1_ref[...], preferred_element_type=jnp.float32)
    h1 = jnp.maximum(h1 + b1_ref[...], 0.0)
    # dropout -> identity (eval mode)

    # fc2 + ReLU
    h2 = jnp.dot(h1.astype(jnp.bfloat16), w2_ref[...],
                 preferred_element_type=jnp.float32)
    h2 = jnp.maximum(h2 + b2_ref[...], 0.0)
    # dropout -> identity (eval mode)

    # fc3 (logits, no activation); padded output lanes carry zeros.
    out = jnp.dot(h2.astype(jnp.bfloat16), w3_ref[...],
                  preferred_element_type=jnp.float32)
    o_ref[...] = (out + b3_ref[...]).astype(o_ref.dtype)


def net_forward(x, params, tb_max=4096):
    """x: (B, 85) float32. params: dict of w1,b1,w2,b2,w3,b3 in (in, out) layout."""
    B, K = x.shape
    assert K == K_IN

    TB = _choose_tile(B, tb_max)
    grid = (pl.cdiv(B, TB),)          # last tile may be partial; Pallas masks it

    bf16, f32 = jnp.bfloat16, jnp.float32

    # Tiny one-time parameter casts/pads (~50 KiB total); x itself is untouched.
    w1p = params["w1"].astype(bf16)                                   # (85, 128)
    b1p = params["b1"].astype(f32)                                    # (1, 128)
    w2p = params["w2"].astype(bf16)                                   # (128, 64)
    b2p = params["b2"].astype(f32)                                    # (1, 64)
    w3p = jnp.zeros((H2, N_PAD), bf16).at[:, :N_OUT].set(params["w3"].astype(bf16))
    b3p = jnp.zeros((1, N_PAD), f32).at[:, :N_OUT].set(params["b3"].astype(f32))

    # x / out stream per grid step; weights & biases pinned resident via
    # constant index maps (DMA'd once, no re-fetch across steps).
    const2 = lambda i: (0, 0)
    in_specs = [
        pl.BlockSpec((TB, K_IN), lambda i: (i, 0)),    # x tile (f32, unpadded K)
        pl.BlockSpec((K_IN, H1), const2),              # w1
        pl.BlockSpec((1, H1), const2),                 # b1
        pl.BlockSpec((H1, H2), const2),                # w2
        pl.BlockSpec((1, H2), const2),                 # b2
        pl.BlockSpec((H2, N_PAD), const2),             # w3
        pl.BlockSpec((1, N_PAD), const2),              # b3
    ]
    out_spec = pl.BlockSpec((TB, N_PAD), lambda i: (i, 0))

    flops = 2 * B * (K_IN * H1 + H1 * H2 + H2 * N_OUT)
    bytes_accessed = (
        B * K_IN * 4                                    # x read (f32, unpadded)
        + (w1p.size + w2p.size + w3p.size) * 2          # bf16 weights
        + (b1p.size + b2p.size + b3p.size) * 4          # f32 biases
        + B * N_PAD * 4                                 # output write
    )

    out_padded = pl.pallas_call(
        _mlp_kernel,
        out_shape=jax.ShapeDtypeStruct((B, N_PAD), jnp.float32),
        grid=grid,
        in_specs=in_specs,
        out_specs=out_spec,
        compiler_params=pltpu.CompilerParams(
            dimension_semantics=("parallel",),
        ),
        cost_estimate=pl.CostEstimate(
            flops=flops, transcendentals=0, bytes_accessed=bytes_accessed),
    )(x, w1p, b1p, w2p, b2p, w3p, b3p)

    return out_padded[:, :N_OUT]


def init_params(key):
    """Deterministic init matching nn.Linear shapes (stored transposed, f32)."""
    ks = jax.random.split(key, 6)

    def linear(kw, kb, fan_in, fan_out):
        bound = 1.0 / jnp.sqrt(fan_in)
        w = jax.random.uniform(kw, (fan_in, fan_out), jnp.float32, -bound, bound)
        b = jax.random.uniform(kb, (1, fan_out), jnp.float32, -bound, bound)
        return w, b

    w1, b1 = linear(ks[0], ks[1], K_IN, H1)
    w2, b2 = linear(ks[2], ks[3], H1, H2)
    w3, b3 = linear(ks[4], ks[5], H2, N_OUT)
    return {"w1": w1, "b1": b1, "w2": w2, "b2": b2, "w3": w3, "b3": b3}


if __name__ == "__main__":
    key = jax.random.PRNGKey(0)
    k_x, k_p = jax.random.split(key)

    B = 8
    x = jax.random.normal(k_x, (B, K_IN), dtype=jnp.float32)
    params = init_params(k_p)

    out = net_forward(x, params)
    jax.block_until_ready(out)
    assert out.shape == (B, N_OUT)

    # Reference in plain JAX, mirroring the kernel's bf16-in / f32-accumulate
    # numerics (eval-mode dropout == identity).  Note: bf16 casting introduces
    # ~1e-3 relative error vs a pure-f32 PyTorch Linear stack.
    def bf(a):
        return a.astype(jnp.bfloat16).astype(jnp.float32)

    h1 = jnp.maximum(bf(x) @ bf(params["w1"]) + params["b1"], 0.0)
    h2 = jnp.maximum(bf(h1) @ bf(params["w2"]) + params["b2"], 0.0)
    ref = bf(h2) @ bf(params["w3"]) + params["b3"]

    assert jnp.allclose(out, ref, atol=1e-3, rtol=1e-3), (
        f"max abs err = {jnp.max(jnp.abs(out - ref))}")

    print("KERNEL_OK")
</pallas_src>

<mosaic_0001>
module attributes {stable_mosaic.version = 11 : i64} {
  func.func @_mlp_kernel(%arg0: i32, %arg1: memref<8x85xf32, #tpu.memory_space<vmem>>, %arg2: memref<85x128xbf16, #tpu.memory_space<vmem>>, %arg3: memref<1x128xf32, #tpu.memory_space<vmem>>, %arg4: memref<128x64xbf16, #tpu.memory_space<vmem>>, %arg5: memref<1x64xf32, #tpu.memory_space<vmem>>, %arg6: memref<64x8xbf16, #tpu.memory_space<vmem>>, %arg7: memref<1x8xf32, #tpu.memory_space<vmem>>, %arg8: memref<8x8xf32, #tpu.memory_space<vmem>>) attributes {dimension_semantics = [#tpu.dimension_semantics<parallel>], iteration_bounds = array<i64: 1>, scalar_prefetch = 0 : i64, scratch_operands = 0 : i64, tpu.core_type = #tpu.core_type<tc>, window_params = [{transform_indices = @transform_0, window_bounds = array<i64: 8, 85>}, {pipeline_mode = #tpu.pipeline_mode<synchronous>, transform_indices = @transform_1, window_bounds = array<i64: 85, 128>}, {pipeline_mode = #tpu.pipeline_mode<synchronous>, transform_indices = @transform_2, window_bounds = array<i64: 1, 128>}, {pipeline_mode = #tpu.pipeline_mode<synchronous>, transform_indices = @transform_3, window_bounds = array<i64: 128, 64>}, {pipeline_mode = #tpu.pipeline_mode<synchronous>, transform_indices = @transform_4, window_bounds = array<i64: 1, 64>}, {pipeline_mode = #tpu.pipeline_mode<synchronous>, transform_indices = @transform_5, window_bounds = array<i64: 64, 8>}, {pipeline_mode = #tpu.pipeline_mode<synchronous>, transform_indices = @transform_6, window_bounds = array<i64: 1, 8>}, {transform_indices = @transform_7, window_bounds = array<i64: 8, 8>}]} {
    %c0 = arith.constant 0 : index
    %c0_0 = arith.constant 0 : index
    %0 = vector.load %arg1[%c0, %c0_0] : memref<8x85xf32, #tpu.memory_space<vmem>>, vector<8x85xf32>
    %1 = arith.truncf %0 : vector<8x85xf32> to vector<8x85xbf16>
    %c0_1 = arith.constant 0 : index
    %c0_2 = arith.constant 0 : index
    %2 = vector.load %arg2[%c0_1, %c0_2] : memref<85x128xbf16, #tpu.memory_space<vmem>>, vector<85x128xbf16>
    %cst = arith.constant dense<0.000000e+00> : vector<8x128xf32>
    %3 = tpu.matmul %1, %2, %cst {dimension_numbers = #tpu.dot_dimension_numbers<[1], [0], [0], [1], [0, 0, 1, 1], [], []>} : vector<8x85xbf16>, vector<85x128xbf16>, vector<8x128xf32> -> vector<8x128xf32>
    %c0_3 = arith.constant 0 : index
    %c0_4 = arith.constant 0 : index
    %4 = vector.load %arg3[%c0_3, %c0_4] : memref<1x128xf32, #tpu.memory_space<vmem>>, vector<1x128xf32>
    %5 = vector.broadcast %4 : vector<1x128xf32> to vector<8x128xf32>
    %6 = arith.addf %3, %5 : vector<8x128xf32>
    %cst_5 = arith.constant 0.000000e+00 : f32
    %7 = vector.broadcast %cst_5 : f32 to vector<8x128xf32>
    %8 = arith.maximumf %6, %7 : vector<8x128xf32>
    %9 = arith.truncf %8 : vector<8x128xf32> to vector<8x128xbf16>
    %c0_6 = arith.constant 0 : index
    %c0_7 = arith.constant 0 : index
    %10 = vector.load %arg4[%c0_6, %c0_7] : memref<128x64xbf16, #tpu.memory_space<vmem>>, vector<128x64xbf16>
    %cst_8 = arith.constant dense<0.000000e+00> : vector<8x64xf32>
    %11 = tpu.matmul %9, %10, %cst_8 {dimension_numbers = #tpu.dot_dimension_numbers<[1], [0], [0], [1], [0, 0, 1, 1], [], []>} : vector<8x128xbf16>, vector<128x64xbf16>, vector<8x64xf32> -> vector<8x64xf32>
    %c0_9 = arith.constant 0 : index
    %c0_10 = arith.constant 0 : index
    %12 = vector.load %arg5[%c0_9, %c0_10] : memref<1x64xf32, #tpu.memory_space<vmem>>, vector<1x64xf32>
    %13 = vector.broadcast %12 : vector<1x64xf32> to vector<8x64xf32>
    %14 = arith.addf %11, %13 : vector<8x64xf32>
    %cst_11 = arith.constant 0.000000e+00 : f32
    %15 = vector.broadcast %cst_11 : f32 to vector<8x64xf32>
    %16 = arith.maximumf %14, %15 : vector<8x64xf32>
    %17 = arith.truncf %16 : vector<8x64xf32> to vector<8x64xbf16>
    %c0_12 = arith.constant 0 : index
    %c0_13 = arith.constant 0 : index
    %18 = vector.load %arg6[%c0_12, %c0_13] : memref<64x8xbf16, #tpu.memory_space<vmem>>, vector<64x8xbf16>
    %cst_14 = arith.constant dense<0.000000e+00> : vector<8x8xf32>
    %19 = tpu.matmul %17, %18, %cst_14 {dimension_numbers = #tpu.dot_dimension_numbers<[1], [0], [0], [1], [0, 0, 1, 1], [], []>} : vector<8x64xbf16>, vector<64x8xbf16>, vector<8x8xf32> -> vector<8x8xf32>
    %c0_15 = arith.constant 0 : index
    %c0_16 = arith.constant 0 : index
    %20 = vector.load %arg7[%c0_15, %c0_16] : memref<1x8xf32, #tpu.memory_space<vmem>>, vector<1x8xf32>
    %21 = vector.broadcast %20 : vector<1x8xf32> to vector<8x8xf32>
    %22 = arith.addf %19, %21 : vector<8x8xf32>
    %c0_17 = arith.constant 0 : index
    %c0_18 = arith.constant 0 : index
    %23 = vector.load %arg8[%c0_17, %c0_18] : memref<8x8xf32, #tpu.memory_space<vmem>>, vector<8x8xf32>
    tpu.vector_store %arg8[%c0_17, %c0_18], %22 {strides = array<i32>} : memref<8x8xf32, #tpu.memory_space<vmem>>, vector<8x8xf32>,
    return
  }
  func.func @transform_0(%arg0: i32) -> (i32, i32) {
    %c0_i32 = arith.constant 0 : i32
    %c0_i32_0 = arith.constant 0 : i32
    return %arg0, %c0_i32 : i32, i32
  }
  func.func @transform_1(%arg0: i32) -> (i32, i32) {
    %c0_i32 = arith.constant 0 : i32
    %c0_i32_0 = arith.constant 0 : i32
    %c0_i32_1 = arith.constant 0 : i32
    return %c0_i32, %c0_i32_0 : i32, i32
  }
  func.func @transform_2(%arg0: i32) -> (i32, i32) {
    %c0_i32 = arith.constant 0 : i32
    %c0_i32_0 = arith.constant 0 : i32
    %c0_i32_1 = arith.constant 0 : i32
    return %c0_i32, %c0_i32_0 : i32, i32
  }
  func.func @transform_3(%arg0: i32) -> (i32, i32) {
    %c0_i32 = arith.constant 0 : i32
    %c0_i32_0 = arith.constant 0 : i32
    %c0_i32_1 = arith.constant 0 : i32
    return %c0_i32, %c0_i32_0 : i32, i32
  }
  func.func @transform_4(%arg0: i32) -> (i32, i32) {
    %c0_i32 = arith.constant 0 : i32
    %c0_i32_0 = arith.constant 0 : i32
    %c0_i32_1 = arith.constant 0 : i32
    return %c0_i32, %c0_i32_0 : i32, i32
  }
  func.func @transform_5(%arg0: i32) -> (i32, i32) {
    %c0_i32 = arith.constant 0 : i32
    %c0_i32_0 = arith.constant 0 : i32
    %c0_i32_1 = arith.constant 0 : i32
    return %c0_i32, %c0_i32_0 : i32, i32
  }
  func.func @transform_6(%arg0: i32) -> (i32, i32) {
    %c0_i32 = arith.constant 0 : i32
    %c0_i32_0 = arith.constant 0 : i32
    %c0_i32_1 = arith.constant 0 : i32
    return %c0_i32, %c0_i32_0 : i32, i32
  }
  func.func @transform_7(%arg0: i32) -> (i32, i32) {
    %c0_i32 = arith.constant 0 : i32
    %c0_i32_0 = arith.constant 0 : i32
    return %arg0, %c0_i32 : i32, i32
  }
}

</mosaic_0001>

<bundles_post_ra>
// kernel: tpu_custom_call.1
= control target key start
LH: loop header
LB: loop body
LE: loop exit
PB: predicated region body
PF: predicated region fallthrough
CT: control target
= control target key end

     0   :  { %v484_v1 = vmov 0.0   ;;  %vm85_vm0 = vcmask 1041408   ;;  %vm485_vm1 = vmmov 0   ;;  %vm86_vm2 = vcmask 1042432   ;;  %s630_s0 = inlined_call_operand.vmem [shape: f32[8,85], index: 0, kind: input, shape index: {}]   ;;  %s631_s1 = inlined_call_operand.vmem [shape: bf16[85,128], index: 1, kind: input, shape index: {}]   ;;  %s632_s2 = inlined_call_operand.vmem [shape: f32[1,128], index: 2, kind: input, shape index: {}]   ;;  %s633_s3 = inlined_call_operand.vmem [shape: bf16[128,64], index: 3, kind: input, shape index: {}]   ;;  %s634_s4 = inlined_call_operand.vmem [shape: f32[1,64], index: 4, kind: input, shape index: {}]   ;;  %s635_s5 = inlined_call_operand.vmem [shape: bf16[64,8], index: 5, kind: input, shape index: {}]   ;;  %s636_s6 = inlined_call_operand.vmem [shape: f32[1,8], index: 6, kind: input, shape index: {}]   ;;  %s637_s7 = inlined_call_operand.hbm [shape: f32[8,8], index: 7, kind: output, shape index: {}]  }
   0x1   :  { %v442_v0 = vld [vmem:[%s631_s1] sm:$0xff]   ;;  %390 = vmatprep.subr.bf16.mxu0 %v484_v1  ;;  %406 = vmatprep.subr.bf16.mxu1 %v484_v1  ;;  %v443_v2 = vld [vmem:[%s631_s1 + $0x8] sm:$0xff]   ;;  %v444_v3 = vld [vmem:[%s631_s1 + $0x10] sm:$0xff]   ;;  %v486_v6 = vmov 65535  }
   0x2   :  { %391 = vmatpush3.bf16.msra.mxu0 %v442_v0  ;;  %v448_v4 = vld [vmem:[%s633_s3] sm:$0xff]   ;;  %402 = vmatprep.mubr.msk.bf16.mxu0 %vm485_vm1, %v484_v1  ;;  %v449_v5 = vld [vmem:[%s633_s3 + $0x8] sm:$0xff]   ;;  %v87_v7 = vsel %vm85_vm0, 4294967295, %v486_v6  ;;  %v445_v8 = vld [vmem:[%s631_s1 + $0x18] sm:$0xff]  }
   0x3   :  { %392 = vmatprep.subr.bf16.mxu0 %v484_v1  ;;  %407 = vmatpush3.bf16.msra.mxu1 %v448_v4  ;;  %v446_v9 = vld [vmem:[%s631_s1 + $0x20] sm:$0xff]   ;;  %v447_v10 = vld [vmem:[%s631_s1 + $0x28] ss:$0 sps:$4 sm:$0x77]   ;;  %v88_v11 = vsel %vm86_vm2, %v87_v7, 0  ;;  %v450_v12 = vld [vmem:[%s633_s3 + $0x10] sm:$0xff]  }
   0x4   :  { %422 = vmatprep.mubr.msk.bf16.mxu1 %vm485_vm1, %v484_v1  ;;  %408 = vmatprep.subr.bf16.mxu1 %v484_v1  ;;  %v451_v13 = vld [vmem:[%s633_s3 + $0x18] sm:$0xff]  }
   0x6   :  { %393 = vmatpush3.bf16.msra.mxu0 %v443_v2 }
   0x7   :  { %394 = vmatprep.subr.bf16.mxu0 %v484_v1  ;;  %409 = vmatpush3.bf16.msra.mxu1 %v449_v5 }
   0x8   :  { %410 = vmatprep.subr.bf16.mxu1 %v484_v1 }
   0xa   :  { %395 = vmatpush3.bf16.msra.mxu0 %v444_v3 }
   0xb   :  { %396 = vmatprep.subr.bf16.mxu0 %v484_v1  ;;  %411 = vmatpush3.bf16.msra.mxu1 %v450_v12 }
   0xe   :  { %397 = vmatpush3.bf16.msra.mxu0 %v445_v8 }
   0xf   :  { %398 = vmatprep.subr.bf16.mxu0 %v484_v1 }
  0x10   :  { %12 = vsyncpa [#allocation3], 0  ;;  %412 = vmatprep.subr.bf16.mxu1 %v484_v1  ;;  %v90_v14 = vand.u32 %v447_v10, %v88_v11  ;;  %v28_v15 = vld [vmem:[%s630_s0] sm:$0xff]  ;;  %vm81_vm3 = vcmask 695296   ;;  %v453_v18 = vld [vmem:[%s633_s3 + $0x28] sm:$0xff]   ;;  %vm286_vm4 = vcmask 523264  }
  0x11   :  { %413 = vmatpush3.bf16.msra.mxu1 %v451_v13  ;;  %v452_v16 = vld [vmem:[%s633_s3 + $0x20] sm:$0xff]   ;;  %v29_v17 = vpack.c.bf16 %v28_v15, %v28_v15  ;;  %v454_v19 = vld [vmem:[%s633_s3 + $0x30] sm:$0xff]   ;;  %v455_v20 = vld [vmem:[%s633_s3 + $0x38] sm:$0xff]   ;;  %s487_s18 = smov [#allocation2]   ;;  %vm330_vm5 = vcmask 64512  }
  0x12   :  { %399 = vmatpush3.bf16.msra.mxu0 %v446_v9  ;;  %414 = vmatprep.subr.bf16.mxu1 %v484_v1  ;;  %v456_v21 = vld [vmem:[%s635_s5] sm:$0xff]   ;;  %v457_v22 = vld [vmem:[%s635_s5 + $0x8] sm:$0xff]   ;;  %v458_v31 = vld [vmem:[%s635_s5 + $0x10] sm:$0xff]  }
  0x13   :  { %400 = vmatprep.subr.bf16.mxu0 %v484_v1  ;;  %v346_v23 = vld [vmem:[%s632_s2] ss:$0 sm:$0xff]  ;;  %v459_v32 = vld [vmem:[%s635_s5 + $0x18] sm:$0xff]   ;;  %s338_s5 = sshll.u32 %s487_s18, 4  ;;  %s339_s5 = int_to_ptr.vmem [resolvable:$true] %s338_s5 }
  0x14   :  { %v354_v33 = vld [vmem:[%s634_s4] ss:$0 sm:$0xff]  ;;  %s460_s4 = scalar_lea.vmem %s339_s5, 128  ;;  %p465_p1 = scmp.lt.s32.totalorder %s339_s5, %s339_s5 }
  0x15   :  { %415 = vmatpush3.bf16.msra.mxu1 %v452_v16  ;;  %v363_v41 = vld [vmem:[%s636_s6] ss:$0 sm:$0xff]  ;;  %p461_p0 = scmp.ne.s32.totalorder %s339_s5, %s460_s4  ;;  %p466_p2 = scmp.lt.s32.totalorder %s460_s4, %s460_s4 }
  0x16   :  { %401 = vmatpush3.bf16.msra.mxu0 %v90_v14  ;;  %416 = vmatprep.subr.bf16.mxu1 %v484_v1 }
  0x17   :  { %426 = vmatprep.subr.bf16.mxu0 %v484_v1  ;;  %p467_p3 = por %p466_p2, %p465_p1 }
  0x19   :  { %403 = vmatmul.mubr.msk.bf16.vlgmr.msra.gmra.mrb[0].mxu0 %vm81_vm3, %v29_v17  ;;  %417 = vmatpush3.bf16.msra.mxu1 %v453_v18  ;;  %p468_p4 = pnand %p467_p3, %p461_p0 }
  0x1a   :  { %434 = vmatprep.mubr.msk.bf16.mxu0 %vm485_vm1, %v484_v1  ;;  %418 = vmatprep.subr.bf16.mxu1 %v484_v1 }
  0x1b   :  { %427 = vmatpush3.bf16.msra.mxu0 %v456_v21 }
  0x1c   :  { %428 = vmatprep.subr.bf16.mxu0 %v484_v1 }
  0x1d   :  { %419 = vmatpush3.bf16.msra.mxu1 %v454_v19 }
  0x1e   :  { %420 = vmatprep.subr.bf16.mxu1 %v484_v1 }
  0x1f   :  { %429 = vmatpush3.bf16.msra.mxu0 %v457_v22 }
  0x20   :  { %430 = vmatprep.subr.bf16.mxu0 %v484_v1 }
  0x21   :  { %421 = vmatpush3.bf16.msra.mxu1 %v455_v20 }
  0x23   :  { %431 = vmatpush3.bf16.msra.mxu0 %v458_v31 }
  0x24   :  { %432 = vmatprep.subr.bf16.mxu0 %v484_v1 }
  0x27   :  { %433 = vmatpush3.bf16.msra.mxu0 %v459_v32 }
  0xec   :  { %v126_v24 = vpop.f32.mrb[0].mxu0 }
  0xed   :  { %v127_v25 = vadd.f32 %v346_v23, %v126_v24  ;;  %v404_v26 = vpop.f32.mrb[1].mxu0 }
  0xee   :  { %v129_v27 = vpop.f32.mrb[2].mxu0 }
  0xef   :  { %v132_v28 = vmax.f32 %v127_v25, 0.0  ;;  %v405_v29 = vpop.f32.mrb[3].mxu0 }
  0xf1   :  { %v133_v30 = vpack.c.bf16 %v132_v28, %v132_v28 }
  0xf3   :  { %423 = vmatmul.mubr.bf16.vlgmr.msra.gmra.mrb[0].mxu1 %v133_v30 }
 0x1c6   :  { %v239_v34 = vpop.f32.mrb[0].mxu1 }
 0x1c7   :  { %v240_v35 = vadd.f32 %v354_v33, %v239_v34  ;;  %v424_v36 = vpop.f32.mrb[1].mxu1 }
 0x1c8   :  { %v242_v37 = vpop.f32.mrb[2].mxu1 }
 0x1c9   :  { %v245_v38 = vmax.f32 %v240_v35, 0.0  ;;  %v425_v39 = vpop.f32.mrb[3].mxu1 }
 0x1cb   :  { %v246_v40 = vpack.c.bf16 %v245_v38, %v245_v38 }
 0x1cd   :  { %435 = vmatmul.mubr.msk.bf16.vlgmr.msra.gmra.mrb[4].mxu0 %vm286_vm4, %v246_v40 }
 0x2a0   :  { %v324_v42 = vpop.f32.mrb[4].mxu0 }
 0x2a1   :  { %v325_v43 = vadd.f32 %v363_v41, %v324_v42  ;;  %v436_v44 = vpop.f32.mrb[5].mxu0 }
 0x2a2   :  { %v327_v45 = vpop.f32.mrb[6].mxu0 }
 0x2a3   :  { %v437_v46 = vpop.f32.mrb[7].mxu0  ;;  %331 = vst.msk [vmem:[#allocation2] sm:$0xff] %vm330_vm5, %v325_v43 }
 0x2a4   :  { %471 = shalt.err (!%p468_p4)
}
 0x2a5   :  { %s472_s6 = scalar_lea.hbm %s637_s7, 128 }
 0x2a6   :  { %p473_p5 = scmp.ne.s32.totalorder %s637_s7, %s472_s6  ;;  %p476_p6 = scmp.lt.u32.totalorder %s472_s6, %s637_s7 }
 0x2a8   :  { %p478_p7 = pnand %p476_p6, %p473_p5 }
 0x2aa   :  { %481 = shalt.err (!%p478_p7)
}
 0x2ab   :  { %341 = dma.vmem_to_hbm [thread:$0]  %s339_s5, 128, %s637_s7, [#allocation3]  }
 0x2ac   :  { %482 = dma.done.wait [#allocation3], 128  }
 0x2ad   :  { %483 = vsyncadd [#allocation3], 4294967168 }
 0x2ae   :  { %345 = vsyncpa [#allocation3], 1 }

</bundles_post_ra>
